<compile_context>
chip_gen: v5e
topology: v5e:2x2
jax: 0.10.0
libtpu: 0.0.40
codegen_flags: <defaults>
</compile_context>

<pallas_src>
import functools

import numpy as np
import jax
import jax.numpy as jnp
from jax import lax
from jax.experimental import pallas as pl
from jax.experimental.pallas import tpu as pltpu

EPS = 1e-5


def _con2d_bn_relu_kernel(x_ref, w_ref, gamma_ref, beta_ref, o_ref, *,
                          W, Wo, K, inv_count):
    """One channel-tile, all refs in VMEM.

      x_ref:     (N, CT, H*W)   input (native dtype), spatial flat on lanes
      w_ref:     (1, CT, K*K)   depthwise taps (f32)
      gamma_ref: (1, CT, 1)     BN weight (f32)
      beta_ref:  (1, CT, 1)     BN bias   (f32)
      o_ref:     (N, CT, Ho*W)  lane-dense output rows
    """
    HW = x_ref.shape[-1]
    HoW = o_ref.shape[-1]

    # Single slab load; upcast happens in-registers (HBM traffic stays at the
    # activation's native width).
    x = x_ref[...].astype(jnp.float32)
    w = w_ref[...]                                   # hoisted out of tap loop

    # ---- depthwise conv (stride 1, VALID): load-once + XLU lane-rolls -------
    # Tap (kh, kw) needs x[p + kh*W + kw]; a left circular roll (shift HW - s)
    # puts that value at lane p.  Wrapped lanes only land in positions that the
    # validity mask below excludes.
    acc = x * w[:, :, 0:1]
    for kh in range(K):                              # static unroll over taps
        for kw in range(K):
            if kh == 0 and kw == 0:
                continue
            s = kh * W + kw
            xs = pltpu.roll(x, HW - s, axis=2)       # xs[p] = x[(p + s) % HW]
            acc = acc + xs * w[:, :, kh * K + kw:kh * K + kw + 1]
    # NOTE: the conv bias is folded away: training-mode BN output
    # gamma*(z - mean(z))*rsqrt(var(z)+eps) + beta is invariant to adding a
    # per-channel constant, so it never needs to touch the slab.

    # Lane p encodes flat position oh*W + ow; it is a real conv output iff
    # (p mod W) < Wo and p < Ho*W.  Mask depends on the lane index only.
    col = lax.broadcasted_iota(jnp.int32, (1, 1, HW), 2)
    valid = jnp.logical_and(col % W < Wo, col < HoW)        # (1, 1, HW)

    # ---- BatchNorm2d batch stats: two-pass (centered) variance --------------
    accm = jnp.where(valid, acc, 0.0)
    mean = jnp.sum(jnp.sum(accm, axis=2, keepdims=True), axis=0,
                   keepdims=True) * inv_count               # (1, CT, 1)
    d = jnp.where(valid, acc - mean, 0.0)
    var = jnp.sum(jnp.sum(d * d, axis=2, keepdims=True), axis=0,
                  keepdims=True) * inv_count                # biased variance
    scale = gamma_ref[...] * lax.rsqrt(var + EPS)           # fold BN affine
    shift = beta_ref[...] - mean * scale

    # ---- normalize + affine + ReLU; zero dead lanes; one wide dense store ---
    y = jnp.maximum(acc[:, :, :HoW] * scale + shift, 0.0)
    y = jnp.where(valid[:, :, :HoW], y, 0.0)   # deterministic zeros in margin
    o_ref[...] = y.astype(o_ref.dtype)


def _pick_channel_tile(C):
    # Channels are BN-independent, so channel tiling needs no cross-block
    # reduction; tiles >= 8 fill the sublane axis of each vreg.
    for ct in (64, 32, 16, 8):
        if C % ct == 0:
            return ct
    return C


def con2d_forward(x_nchw, weight, bias, gamma, beta):
    """Con2d.forward.  x_nchw: (N, C, H, W); weight: (C, 1, K, K) depthwise;
    bias/gamma/beta: (C,).  Returns (N, C, H-K+1, W-K+1) in x's dtype."""
    del bias  # exactly cancelled by training-mode BN mean subtraction
    N, C, H, W = x_nchw.shape
    K = weight.shape[-1]
    Ho, Wo = H - K + 1, W - K + 1
    HW, HoW = H * W, Ho * W
    CT = _pick_channel_tile(C)

    # Contiguous (free) reshapes only -- no transposes, no activation dtype cast.
    x3 = x_nchw.reshape(N, C, HW)
    w3 = weight.reshape(1, C, K * K).astype(jnp.float32)
    g3 = gamma.reshape(1, C, 1).astype(jnp.float32)
    bt3 = beta.reshape(1, C, 1).astype(jnp.float32)

    kernel = functools.partial(_con2d_bn_relu_kernel, W=W, Wo=Wo, K=K,
                               inv_count=1.0 / float(N * Ho * Wo))

    grid_spec = pltpu.PrefetchScalarGridSpec(
        num_scalar_prefetch=0,
        grid=(C // CT,),
        in_specs=[
            pl.BlockSpec((N, CT, HW), lambda c: (0, c, 0)),
            pl.BlockSpec((1, CT, K * K), lambda c: (0, c, 0)),
            pl.BlockSpec((1, CT, 1), lambda c: (0, c, 0)),
            pl.BlockSpec((1, CT, 1), lambda c: (0, c, 0)),
        ],
        out_specs=pl.BlockSpec((N, CT, HoW), lambda c: (0, c, 0)),
    )

    cost = pl.CostEstimate(
        flops=(2 * K * K + 8) * N * C * Ho * Wo,
        transcendentals=C,
        bytes_accessed=(x3.size * x3.dtype.itemsize
                        + N * C * HoW * x3.dtype.itemsize
                        + C * (K * K + 2) * 4),
    )

    out_rows = pl.pallas_call(
        kernel,
        grid_spec=grid_spec,
        out_shape=jax.ShapeDtypeStruct((N, C, HoW), x_nchw.dtype),
        compiler_params=pltpu.CompilerParams(
            dimension_semantics=("parallel",),
            vmem_limit_bytes=28 * 1024 * 1024),
        cost_estimate=cost,
    )(x3, w3, g3, bt3)

    # Lane p = oh*W + ow: unflatten (free reshape) and drop the (K-1)-wide
    # right margin to recover NCHW (N, C, Ho, Wo).
    return out_rows.reshape(N, C, Ho, W)[:, :, :, :Wo]


def _reference(x_nchw, weight, bias, gamma, beta):
    """Pure-JAX reference mirroring the PyTorch module (training-mode BN)."""
    C = x_nchw.shape[1]
    conv = jax.lax.conv_general_dilated(
        x_nchw.astype(jnp.float32), weight.astype(jnp.float32),
        window_strides=(1, 1), padding='VALID',
        dimension_numbers=('NCHW', 'OIHW', 'NCHW'),
        feature_group_count=C)
    conv = conv + bias.reshape(1, -1, 1, 1)
    mean = jnp.mean(conv, axis=(0, 2, 3), keepdims=True)
    var = jnp.mean((conv - mean) ** 2, axis=(0, 2, 3), keepdims=True)
    y = (conv - mean) / jnp.sqrt(var + EPS)
    y = y * gamma.reshape(1, -1, 1, 1) + beta.reshape(1, -1, 1, 1)
    return jnp.maximum(y, 0.0)


if __name__ == "__main__":
    key = jax.random.PRNGKey(0)
    k1, k2, k3, k4, k5 = jax.random.split(key, 5)

    # Small shapes consistent with the module (depthwise: out_ch == in_ch).
    N, C, H, W, K = 2, 4, 16, 16, 3
    x = jax.random.normal(k1, (N, C, H, W), jnp.float32)
    weight = 0.1 * jax.random.normal(k2, (C, 1, K, K), jnp.float32)  # Conv2d.weight
    bias = 0.1 * jax.random.normal(k3, (C,), jnp.float32)            # Conv2d.bias
    gamma = 1.0 + 0.1 * jax.random.normal(k4, (C,), jnp.float32)     # bn.weight
    beta = 0.1 * jax.random.normal(k5, (C,), jnp.float32)            # bn.bias

    out = jax.block_until_ready(con2d_forward(x, weight, bias, gamma, beta))
    ref = jax.block_until_ready(_reference(x, weight, bias, gamma, beta))

    assert out.shape == (N, C, H - K + 1, W - K + 1)
    np.testing.assert_allclose(np.asarray(out), np.asarray(ref),
                               rtol=1e-3, atol=1e-3)
    print("KERNEL_OK")
</pallas_src>

<mosaic_0001>
module attributes {stable_mosaic.version = 11 : i64} {
  func.func @_con2d_bn_relu_kernel(%arg0: i32, %arg1: memref<2x4x256xf32, #tpu.memory_space<vmem>>, %arg2: memref<1x4x9xf32, #tpu.memory_space<vmem>>, %arg3: memref<1x4x1xf32, #tpu.memory_space<vmem>>, %arg4: memref<1x4x1xf32, #tpu.memory_space<vmem>>, %arg5: memref<2x4x224xf32, #tpu.memory_space<vmem>>) attributes {dimension_semantics = [#tpu.dimension_semantics<parallel>], iteration_bounds = array<i64: 1>, scalar_prefetch = 0 : i64, scratch_operands = 0 : i64, tpu.core_type = #tpu.core_type<tc>, window_params = [{transform_indices = @transform_0, window_bounds = array<i64: 2, 4, 256>}, {transform_indices = @transform_1, window_bounds = array<i64: 1, 4, 9>}, {transform_indices = @transform_2, window_bounds = array<i64: 1, 4, 1>}, {transform_indices = @transform_3, window_bounds = array<i64: 1, 4, 1>}, {transform_indices = @transform_4, window_bounds = array<i64: 2, 4, 224>}]} {
    %c0 = arith.constant 0 : index
    %c0_0 = arith.constant 0 : index
    %c0_1 = arith.constant 0 : index
    %0 = vector.load %arg1[%c0, %c0_0, %c0_1] : memref<2x4x256xf32, #tpu.memory_space<vmem>>, vector<2x4x256xf32>
    %c0_2 = arith.constant 0 : index
    %c0_3 = arith.constant 0 : index
    %c0_4 = arith.constant 0 : index
    %1 = vector.load %arg2[%c0_2, %c0_3, %c0_4] : memref<1x4x9xf32, #tpu.memory_space<vmem>>, vector<1x4x9xf32>
    %2 = vector.extract_strided_slice %1 {offsets = [0, 0, 0], sizes = [1, 4, 1], strides = [1, 1, 1]} : vector<1x4x9xf32> to vector<1x4x1xf32>
    %3 = vector.broadcast %2 : vector<1x4x1xf32> to vector<2x4x256xf32>
    %4 = arith.mulf %0, %3 : vector<2x4x256xf32>
    %c255_i32 = arith.constant 255 : i32
    %5 = tpu.dynamic_rotate %0 by %c255_i32 dim 2 : vector<2x4x256xf32>, i32 -> vector<2x4x256xf32>
    %6 = vector.extract_strided_slice %1 {offsets = [0, 0, 1], sizes = [1, 4, 1], strides = [1, 1, 1]} : vector<1x4x9xf32> to vector<1x4x1xf32>
    %7 = vector.broadcast %6 : vector<1x4x1xf32> to vector<2x4x256xf32>
    %8 = arith.mulf %5, %7 : vector<2x4x256xf32>
    %9 = arith.addf %4, %8 : vector<2x4x256xf32>
    %c254_i32 = arith.constant 254 : i32
    %10 = tpu.dynamic_rotate %0 by %c254_i32 dim 2 : vector<2x4x256xf32>, i32 -> vector<2x4x256xf32>
    %11 = vector.extract_strided_slice %1 {offsets = [0, 0, 2], sizes = [1, 4, 1], strides = [1, 1, 1]} : vector<1x4x9xf32> to vector<1x4x1xf32>
    %12 = vector.broadcast %11 : vector<1x4x1xf32> to vector<2x4x256xf32>
    %13 = arith.mulf %10, %12 : vector<2x4x256xf32>
    %14 = arith.addf %9, %13 : vector<2x4x256xf32>
    %c240_i32 = arith.constant 240 : i32
    %15 = tpu.dynamic_rotate %0 by %c240_i32 dim 2 : vector<2x4x256xf32>, i32 -> vector<2x4x256xf32>
    %16 = vector.extract_strided_slice %1 {offsets = [0, 0, 3], sizes = [1, 4, 1], strides = [1, 1, 1]} : vector<1x4x9xf32> to vector<1x4x1xf32>
    %17 = vector.broadcast %16 : vector<1x4x1xf32> to vector<2x4x256xf32>
    %18 = arith.mulf %15, %17 : vector<2x4x256xf32>
    %19 = arith.addf %14, %18 : vector<2x4x256xf32>
    %c239_i32 = arith.constant 239 : i32
    %20 = tpu.dynamic_rotate %0 by %c239_i32 dim 2 : vector<2x4x256xf32>, i32 -> vector<2x4x256xf32>
    %21 = vector.extract_strided_slice %1 {offsets = [0, 0, 4], sizes = [1, 4, 1], strides = [1, 1, 1]} : vector<1x4x9xf32> to vector<1x4x1xf32>
    %22 = vector.broadcast %21 : vector<1x4x1xf32> to vector<2x4x256xf32>
    %23 = arith.mulf %20, %22 : vector<2x4x256xf32>
    %24 = arith.addf %19, %23 : vector<2x4x256xf32>
    %c238_i32 = arith.constant 238 : i32
    %25 = tpu.dynamic_rotate %0 by %c238_i32 dim 2 : vector<2x4x256xf32>, i32 -> vector<2x4x256xf32>
    %26 = vector.extract_strided_slice %1 {offsets = [0, 0, 5], sizes = [1, 4, 1], strides = [1, 1, 1]} : vector<1x4x9xf32> to vector<1x4x1xf32>
    %27 = vector.broadcast %26 : vector<1x4x1xf32> to vector<2x4x256xf32>
    %28 = arith.mulf %25, %27 : vector<2x4x256xf32>
    %29 = arith.addf %24, %28 : vector<2x4x256xf32>
    %c224_i32 = arith.constant 224 : i32
    %30 = tpu.dynamic_rotate %0 by %c224_i32 dim 2 : vector<2x4x256xf32>, i32 -> vector<2x4x256xf32>
    %31 = vector.extract_strided_slice %1 {offsets = [0, 0, 6], sizes = [1, 4, 1], strides = [1, 1, 1]} : vector<1x4x9xf32> to vector<1x4x1xf32>
    %32 = vector.broadcast %31 : vector<1x4x1xf32> to vector<2x4x256xf32>
    %33 = arith.mulf %30, %32 : vector<2x4x256xf32>
    %34 = arith.addf %29, %33 : vector<2x4x256xf32>
    %c223_i32 = arith.constant 223 : i32
    %35 = tpu.dynamic_rotate %0 by %c223_i32 dim 2 : vector<2x4x256xf32>, i32 -> vector<2x4x256xf32>
    %36 = vector.extract_strided_slice %1 {offsets = [0, 0, 7], sizes = [1, 4, 1], strides = [1, 1, 1]} : vector<1x4x9xf32> to vector<1x4x1xf32>
    %37 = vector.broadcast %36 : vector<1x4x1xf32> to vector<2x4x256xf32>
    %38 = arith.mulf %35, %37 : vector<2x4x256xf32>
    %39 = arith.addf %34, %38 : vector<2x4x256xf32>
    %c222_i32 = arith.constant 222 : i32
    %40 = tpu.dynamic_rotate %0 by %c222_i32 dim 2 : vector<2x4x256xf32>, i32 -> vector<2x4x256xf32>
    %41 = vector.extract_strided_slice %1 {offsets = [0, 0, 8], sizes = [1, 4, 1], strides = [1, 1, 1]} : vector<1x4x9xf32> to vector<1x4x1xf32>
    %42 = vector.broadcast %41 : vector<1x4x1xf32> to vector<2x4x256xf32>
    %43 = arith.mulf %40, %42 : vector<2x4x256xf32>
    %44 = arith.addf %39, %43 : vector<2x4x256xf32>
    %45 = tpu.iota {dimensions = array<i32: 2>} : vector<1x1x256xi32>
    %c16_i32 = arith.constant 16 : i32
    %c0_i32 = arith.constant 0 : i32
    %46 = arith.cmpi eq, %c16_i32, %c0_i32 : i32
    %c1_i32 = arith.constant 1 : i32
    %47 = arith.select %46, %c1_i32, %c16_i32 : i32
    %48 = vector.broadcast %47 : i32 to vector<1x1x256xi32>
    %49 = arith.remsi %45, %48 : vector<1x1x256xi32>
    %c0_i32_5 = arith.constant 0 : i32
    %50 = vector.broadcast %c0_i32_5 : i32 to vector<1x1x256xi32>
    %51 = arith.cmpi ne, %49, %50 : vector<1x1x256xi32>
    %c0_i32_6 = arith.constant 0 : i32
    %52 = vector.broadcast %c0_i32_6 : i32 to vector<1x1x256xi32>
    %53 = arith.cmpi slt, %49, %52 : vector<1x1x256xi32>
    %c0_i32_7 = arith.constant 0 : i32
    %54 = arith.cmpi slt, %47, %c0_i32_7 : i32
    %55 = vector.broadcast %54 : i1 to vector<1x1x256xi1>
    %56 = vector.broadcast %55 : vector<1x1x256xi1> to vector<1x1x256xi1>
    %57 = arith.xori %53, %56 : vector<1x1x256xi1>
    %58 = arith.andi %57, %51 : vector<1x1x256xi1>
    %59 = vector.broadcast %47 : i32 to vector<1x1x256xi32>
    %60 = arith.addi %49, %59 : vector<1x1x256xi32>
    %61 = arith.select %58, %60, %49 : vector<1x1x256xi1>, vector<1x1x256xi32>
    %c14_i32 = arith.constant 14 : i32
    %62 = vector.broadcast %c14_i32 : i32 to vector<1x1x256xi32>
    %63 = arith.cmpi slt, %61, %62 : vector<1x1x256xi32>
    %c224_i32_8 = arith.constant 224 : i32
    %64 = vector.broadcast %c224_i32_8 : i32 to vector<1x1x256xi32>
    %65 = arith.cmpi slt, %45, %64 : vector<1x1x256xi32>
    %66 = arith.andi %63, %65 : vector<1x1x256xi1>
    %cst = arith.constant 0.000000e+00 : f32
    %67 = vector.shape_cast %66 : vector<1x1x256xi1> to vector<1x1x256xi1>
    %68 = vector.broadcast %67 : vector<1x1x256xi1> to vector<2x4x256xi1>
    %69 = vector.broadcast %cst : f32 to vector<2x4x256xf32>
    %70 = arith.select %68, %44, %69 : vector<2x4x256xi1>, vector<2x4x256xf32>
    %cst_9 = arith.constant dense<0.000000e+00> : vector<2x4xf32>
    %71 = vector.multi_reduction <add>, %70, %cst_9 [2] : vector<2x4x256xf32> to vector<2x4xf32>
    %72 = vector.shape_cast %71 : vector<2x4xf32> to vector<2x4x1xf32>
    %cst_10 = arith.constant dense<0.000000e+00> : vector<4x1xf32>
    %73 = vector.multi_reduction <add>, %72, %cst_10 [0] : vector<2x4x1xf32> to vector<4x1xf32>
    %74 = vector.shape_cast %73 : vector<4x1xf32> to vector<1x4x1xf32>
    %cst_11 = arith.constant 0.00255102036 : f32
    %75 = vector.broadcast %cst_11 : f32 to vector<1x4x1xf32>
    %76 = arith.mulf %74, %75 : vector<1x4x1xf32>
    %77 = vector.broadcast %76 : vector<1x4x1xf32> to vector<2x4x256xf32>
    %78 = arith.subf %44, %77 : vector<2x4x256xf32>
    %cst_12 = arith.constant 0.000000e+00 : f32
    %79 = vector.shape_cast %66 : vector<1x1x256xi1> to vector<1x1x256xi1>
    %80 = vector.broadcast %79 : vector<1x1x256xi1> to vector<2x4x256xi1>
    %81 = vector.broadcast %cst_12 : f32 to vector<2x4x256xf32>
    %82 = arith.select %80, %78, %81 : vector<2x4x256xi1>, vector<2x4x256xf32>
    %83 = arith.mulf %82, %82 : vector<2x4x256xf32>
    %cst_13 = arith.constant dense<0.000000e+00> : vector<2x4xf32>
    %84 = vector.multi_reduction <add>, %83, %cst_13 [2] : vector<2x4x256xf32> to vector<2x4xf32>
    %85 = vector.shape_cast %84 : vector<2x4xf32> to vector<2x4x1xf32>
    %cst_14 = arith.constant dense<0.000000e+00> : vector<4x1xf32>
    %86 = vector.multi_reduction <add>, %85, %cst_14 [0] : vector<2x4x1xf32> to vector<4x1xf32>
    %87 = vector.shape_cast %86 : vector<4x1xf32> to vector<1x4x1xf32>
    %cst_15 = arith.constant 0.00255102036 : f32
    %88 = vector.broadcast %cst_15 : f32 to vector<1x4x1xf32>
    %89 = arith.mulf %87, %88 : vector<1x4x1xf32>
    %c0_16 = arith.constant 0 : index
    %c0_17 = arith.constant 0 : index
    %c0_18 = arith.constant 0 : index
    %90 = vector.load %arg3[%c0_16, %c0_17, %c0_18] : memref<1x4x1xf32, #tpu.memory_space<vmem>>, vector<1x4x1xf32>
    %cst_19 = arith.constant 9.99999974E-6 : f32
    %91 = vector.broadcast %cst_19 : f32 to vector<1x4x1xf32>
    %92 = arith.addf %89, %91 : vector<1x4x1xf32>
    %93 = math.rsqrt %92 : vector<1x4x1xf32>
    %94 = arith.mulf %90, %93 : vector<1x4x1xf32>
    %c0_20 = arith.constant 0 : index
    %c0_21 = arith.constant 0 : index
    %c0_22 = arith.constant 0 : index
    %95 = vector.load %arg4[%c0_20, %c0_21, %c0_22] : memref<1x4x1xf32, #tpu.memory_space<vmem>>, vector<1x4x1xf32>
    %96 = arith.mulf %76, %94 : vector<1x4x1xf32>
    %97 = arith.subf %95, %96 : vector<1x4x1xf32>
    %98 = vector.extract_strided_slice %44 {offsets = [0, 0, 0], sizes = [2, 4, 224], strides = [1, 1, 1]} : vector<2x4x256xf32> to vector<2x4x224xf32>
    %99 = vector.broadcast %94 : vector<1x4x1xf32> to vector<2x4x224xf32>
    %100 = arith.mulf %98, %99 : vector<2x4x224xf32>
    %101 = vector.broadcast %97 : vector<1x4x1xf32> to vector<2x4x224xf32>
    %102 = arith.addf %100, %101 : vector<2x4x224xf32>
    %cst_23 = arith.constant 0.000000e+00 : f32
    %103 = vector.broadcast %cst_23 : f32 to vector<2x4x224xf32>
    %104 = arith.maximumf %102, %103 : vector<2x4x224xf32>
    %105 = vector.extract_strided_slice %66 {offsets = [0, 0, 0], sizes = [1, 1, 224], strides = [1, 1, 1]} : vector<1x1x256xi1> to vector<1x1x224xi1>
    %cst_24 = arith.constant 0.000000e+00 : f32
    %106 = vector.shape_cast %105 : vector<1x1x224xi1> to vector<1x1x224xi1>
    %107 = vector.broadcast %106 : vector<1x1x224xi1> to vector<2x4x224xi1>
    %108 = vector.broadcast %cst_24 : f32 to vector<2x4x224xf32>
    %109 = arith.select %107, %104, %108 : vector<2x4x224xi1>, vector<2x4x224xf32>
    %c0_25 = arith.constant 0 : index
    %c0_26 = arith.constant 0 : index
    %c0_27 = arith.constant 0 : index
    %110 = vector.load %arg5[%c0_25, %c0_26, %c0_27] : memref<2x4x224xf32, #tpu.memory_space<vmem>>, vector<2x4x224xf32>
    tpu.vector_store %arg5[%c0_25, %c0_26, %c0_27], %109 {strides = array<i32>} : memref<2x4x224xf32, #tpu.memory_space<vmem>>, vector<2x4x224xf32>,
    return
  }
  func.func @transform_0(%arg0: i32) -> (i32, i32, i32) {
    %c0_i32 = arith.constant 0 : i32
    %c0_i32_0 = arith.constant 0 : i32
    %c0_i32_1 = arith.constant 0 : i32
    return %c0_i32, %arg0, %c0_i32_0 : i32, i32, i32
  }
  func.func @transform_1(%arg0: i32) -> (i32, i32, i32) {
    %c0_i32 = arith.constant 0 : i32
    %c0_i32_0 = arith.constant 0 : i32
    %c0_i32_1 = arith.constant 0 : i32
    return %c0_i32, %arg0, %c0_i32_0 : i32, i32, i32
  }
  func.func @transform_2(%arg0: i32) -> (i32, i32, i32) {
    %c0_i32 = arith.constant 0 : i32
    %c0_i32_0 = arith.constant 0 : i32
    %c0_i32_1 = arith.constant 0 : i32
    return %c0_i32, %arg0, %c0_i32_0 : i32, i32, i32
  }
  func.func @transform_3(%arg0: i32) -> (i32, i32, i32) {
    %c0_i32 = arith.constant 0 : i32
    %c0_i32_0 = arith.constant 0 : i32
    %c0_i32_1 = arith.constant 0 : i32
    return %c0_i32, %arg0, %c0_i32_0 : i32, i32, i32
  }
  func.func @transform_4(%arg0: i32) -> (i32, i32, i32) {
    %c0_i32 = arith.constant 0 : i32
    %c0_i32_0 = arith.constant 0 : i32
    %c0_i32_1 = arith.constant 0 : i32
    return %c0_i32, %arg0, %c0_i32_0 : i32, i32, i32
  }
}

</mosaic_0001>

<bundles_post_ra>
// kernel: tpu_custom_call.1
= control target key start
LH: loop header
LB: loop body
LE: loop exit
PB: predicated region body
PF: predicated region fallthrough
CT: control target
= control target key end

     0   :  { %9 = vsyncpa [#allocation3], 0  ;;  %s955_s0 = inlined_call_operand.hbm [shape: f32[2,4,256], index: 0, kind: input, shape index: {}]   ;;  %s956_s1 = inlined_call_operand.vmem [shape: f32[1,4,9], index: 1, kind: input, shape index: {}]   ;;  %s957_s2 = inlined_call_operand.vmem [shape: f32[1,4,1], index: 2, kind: input, shape index: {}]   ;;  %s958_s3 = inlined_call_operand.vmem [shape: f32[1,4,1], index: 3, kind: input, shape index: {}]   ;;  %s959_s4 = inlined_call_operand.hbm [shape: f32[2,4,224], index: 4, kind: output, shape index: {}]  }
   0x1   :  { %10 = vsyncpa [#allocation4], 0  ;;  %s15_s17 = sshll.u32 %s955_s0, 4  ;;  %s691_s18 = smov [#allocation2]   ;;  %s16_s17 = int_to_ptr.hbm [resolvable:$true] %s15_s17 }
   0x2   :  { %s17_s19 = sshll.u32 %s691_s18, 4  ;;  %s692_s20 = smov 128   ;;  %s18_s19 = int_to_ptr.vmem [resolvable:$true] %s17_s19 }
   0x3   :  { %s693_s21 = smov 8  }
   0x4   :  { %23 = dma.hbm_to_vmem [thread:$0]  %s16_s17, 256, %s18_s19, [#allocation3], %s692_s20, %s692_s20, %s693_s21  }
   0x5   :  { %687 = dma.done.wait [#allocation3], 256  }
   0x6   :  { %688 = vsyncadd [#allocation3], 4294967040  ;;  %v694_v0 = vmov 2   ;;  %v695_v1 = vmov 1   ;;  %v747_v2 = vld [vmem:[%s956_s1] sm:$0xf]  ;;  %v69_v47 = vlaneseq }
   0x7   :  { %628 = vset.pattern.permute.xlu1 %v694_v0  ;;  %626 = vset.pattern.permute.xlu2 %v695_v1  ;;  %v749_v3 = vld [vmem:[#allocation2] sm:$0xff]  ;;  %v751_v4 = vld [vmem:[#allocation2 + $0x8] sm:$0xff]  ;;  %s696_s0 = smov 127   ;;  %v697_v8 = vmov 0   ;;  %v698_v10 = vmov 3   ;;  %s699_s1 = smov 126  }
   0x8   :  { %122 = vperm.xlu1 %628, %v747_v2   ;;  %77 = vperm.xlu2 %626, %v747_v2   ;;  %50 = vst [vmem:[#allocation1] ss:$2 sm:$0xff] %v749_v3  ;;  %s700_s24 = smov 112   ;;  %s701_s25 = smov 111   ;;  %v702_v31 = vmov 4   ;;  %v704_v36 = vmov 5  }
   0x9   :  { %54 = vst [vmem:[#allocation1 + $0x10] ss:$2 sm:$0xff] %v751_v4  ;;  %629 = vset.pattern.permute.xlu0 %v698_v10  ;;  %s703_s26 = smov 110   ;;  %s705_s27 = smov 96   ;;  %v706_v37 = vmov 6   ;;  %v707_v38 = vmov 7  }
   0xa   :  { %s708_s28 = smov 95   ;;  %v709_v40 = vmov 8   ;;  %s710_s29 = smov 94   ;;  %v711_v49 = vmov 839922192   ;;  %v781_v52 = vand.u32 127, %v69_v47 }
   0xb   :  { %v42_v50 = vunpack.c.l.s4 %v711_v49  ;;  %vm90_vm1 = vcmask 1043456   ;;  %s591_s10 = sshll.u32 %s959_s4, 4  ;;  %s592_s10 = int_to_ptr.hbm [resolvable:$true] %s591_s10 }
   0xc   :  { %vm71_vm0 = vcmp.lt.s32.totalorder %v781_v52, 127  ;;  %vm116_vm2 = vcmp.lt.s32.totalorder %v781_v52, 126  ;;  %vm160_vm3 = vcmp.lt.s32.totalorder %v781_v52, 112  ;;  %vm204_vm4 = vcmp.lt.s32.totalorder %v781_v52, 111 }
   0xd   :  { %v783_v53 = vunpack.c.0.s8 %v42_v50  ;;  %vm248_vm5 = vcmp.lt.s32.totalorder %v781_v52, 110  ;;  %vm292_vm6 = vcmp.lt.s32.totalorder %v781_v52, 96  ;;  %vm336_vm7 = vcmp.lt.s32.totalorder %v781_v52, 95 }
   0xe   :  { %vm380_vm8 = vcmp.lt.s32.totalorder %v781_v52, 94 }
   0xf   :  { %v52_v5 = vld.sshfl [vmem:[#allocation1 + $0x8] sm:$0xff pattern:$0x75316420]  ;;  %v51_v6 = vld.sshfl [vmem:[#allocation1] sm:$0xff pattern:$0x75316420] }
  0x10   :  { %65 = vrot.lane.b32.xlu1 %v52_v5, %s696_s0  ;;  %61 = vrot.lane.b32.xlu0 %v51_v6, %s696_s0  ;;  %97 = vst [vmem:[#allocation1] ss:$2 sm:$0xff] %v749_v3  ;;  %v56_v7 = vld.sshfl [vmem:[#allocation1 + $0x18] sm:$0xff pattern:$0x75316420] }
  0x11   :  { %627 = vset.pattern.permute.xlu2 %v697_v8  ;;  %v55_v9 = vld.sshfl [vmem:[#allocation1 + $0x10] sm:$0xff pattern:$0x75316420]  ;;  %635 = vset.pattern.permute.xlu1 %v697_v8 }
  0x12   :  { %39 = vperm.xlu2 %627, %v747_v2   ;;  %101 = vst [vmem:[#allocation1 + $0x10] ss:$2 sm:$0xff] %v751_v4 }
  0x17   :  { %v99_v11 = vld.sshfl [vmem:[#allocation1 + $0x8] sm:$0xff pattern:$0x75316420]  ;;  %v98_v12 = vld.sshfl [vmem:[#allocation1] sm:$0xff pattern:$0x75316420] }
  0x18   :  { %67 = vrot.lane.b32.xlu1 %v56_v7, %s696_s0  ;;  %63 = vrot.lane.b32.xlu0 %v55_v9, %s696_s0  ;;  %141 = vst [vmem:[#allocation1] ss:$2 sm:$0xff] %v749_v3 }
  0x19   :  { %v102_v13 = vld.sshfl [vmem:[#allocation1 + $0x10] sm:$0xff pattern:$0x75316420]  ;;  %v103_v14 = vld.sshfl [vmem:[#allocation1 + $0x18] sm:$0xff pattern:$0x75316420] }
  0x1a   :  { %112 = vrot.lane.b32.xlu2 %v99_v11, %s699_s1  ;;  %145 = vst [vmem:[#allocation1 + $0x10] ss:$2 sm:$0xff] %v751_v4 }
  0x1f   :  { %v142_v15 = vld.sshfl [vmem:[#allocation1] sm:$0xff pattern:$0x75316420]  ;;  %v143_v16 = vld.sshfl [vmem:[#allocation1 + $0x8] sm:$0xff pattern:$0x75316420] }
  0x20   :  { %110 = vrot.lane.b32.xlu1 %v102_v13, %s699_s1  ;;  %108 = vrot.lane.b32.xlu0 %v98_v12, %s699_s1  ;;  %185 = vst [vmem:[#allocation1] ss:$2 sm:$0xff] %v749_v3 }
  0x21   :  { %v147_v17 = vld.sshfl [vmem:[#allocation1 + $0x18] sm:$0xff pattern:$0x75316420]  ;;  %v146_v18 = vld.sshfl [vmem:[#allocation1 + $0x10] sm:$0xff pattern:$0x75316420] }
  0x22   :  { %152 = vrot.lane.b32.xlu2 %v142_v15, %s700_s24  ;;  %189 = vst [vmem:[#allocation1 + $0x10] ss:$2 sm:$0xff] %v751_v4 }
  0x27   :  { %v186_v19 = vld.sshfl [vmem:[#allocation1] sm:$0xff pattern:$0x75316420]  ;;  %v187_v20 = vld.sshfl [vmem:[#allocation1 + $0x8] sm:$0xff pattern:$0x75316420] }
  0x28   :  { %114 = vrot.lane.b32.xlu0 %v103_v14, %s699_s1  ;;  %156 = vrot.lane.b32.xlu1 %v143_v16, %s700_s24  ;;  %229 = vst [vmem:[#allocation1] ss:$2 sm:$0xff] %v749_v3 }
  0x29   :  { %v190_v21 = vld.sshfl [vmem:[#allocation1 + $0x10] sm:$0xff pattern:$0x75316420]  ;;  %v191_v22 = vld.sshfl [vmem:[#allocation1 + $0x18] sm:$0xff pattern:$0x75316420] }
  0x2a   :  { %158 = vrot.lane.b32.xlu2 %v147_v17, %s700_s24  ;;  %233 = vst [vmem:[#allocation1 + $0x10] ss:$2 sm:$0xff] %v751_v4 }
  0x2f   :  { %v230_v23 = vld.sshfl [vmem:[#allocation1] sm:$0xff pattern:$0x75316420]  ;;  %v231_v24 = vld.sshfl [vmem:[#allocation1 + $0x8] sm:$0xff pattern:$0x75316420] }
  0x30   :  { %154 = vrot.lane.b32.xlu0 %v146_v18, %s700_s24  ;;  %196 = vrot.lane.b32.xlu1 %v186_v19, %s701_s25  ;;  %273 = vst [vmem:[#allocation1] ss:$2 sm:$0xff] %v749_v3 }
  0x31   :  { %v234_v25 = vld.sshfl [vmem:[#allocation1 + $0x10] sm:$0xff pattern:$0x75316420]  ;;  %v235_v26 = vld.sshfl [vmem:[#allocation1 + $0x18] sm:$0xff pattern:$0x75316420] }
  0x32   :  { %198 = vrot.lane.b32.xlu2 %v190_v21, %s701_s25  ;;  %277 = vst [vmem:[#allocation1 + $0x10] ss:$2 sm:$0xff] %v751_v4 }
  0x37   :  { %v274_v27 = vld.sshfl [vmem:[#allocation1] sm:$0xff pattern:$0x75316420]  ;;  %v275_v28 = vld.sshfl [vmem:[#allocation1 + $0x8] sm:$0xff pattern:$0x75316420] }
  0x38   :  { %166 = vperm.xlu0 %629, %v747_v2   ;;  %200 = vrot.lane.b32.xlu1 %v187_v20, %s701_s25  ;;  %317 = vst [vmem:[#allocation1] ss:$2 sm:$0xff] %v749_v3 }
  0x39   :  { %v278_v29 = vld.sshfl [vmem:[#allocation1 + $0x10] sm:$0xff pattern:$0x75316420]  ;;  %v279_v30 = vld.sshfl [vmem:[#allocation1 + $0x18] sm:$0xff pattern:$0x75316420] }
  0x3a   :  { %202 = vrot.lane.b32.xlu2 %v191_v22, %s701_s25  ;;  %321 = vst [vmem:[#allocation1 + $0x10] ss:$2 sm:$0xff] %v751_v4 }
  0x3f   :  { %v318_v32 = vld.sshfl [vmem:[#allocation1] sm:$0xff pattern:$0x75316420]  ;;  %v319_v33 = vld.sshfl [vmem:[#allocation1 + $0x8] sm:$0xff pattern:$0x75316420] }
  0x40   :  { %630 = vset.pattern.permute.xlu0 %v702_v31  ;;  %240 = vrot.lane.b32.xlu1 %v230_v23, %s703_s26  ;;  %361 = vst [vmem:[#allocation1] ss:$2 sm:$0xff] %v749_v3 }
  0x41   :  { %210 = vperm.xlu0 %630, %v747_v2   ;;  %v322_v34 = vld.sshfl [vmem:[#allocation1 + $0x10] sm:$0xff pattern:$0x75316420]  ;;  %v323_v35 = vld.sshfl [vmem:[#allocation1 + $0x18] sm:$0xff pattern:$0x75316420] }
  0x42   :  { %242 = vrot.lane.b32.xlu2 %v234_v25, %s703_s26  ;;  %365 = vst [vmem:[#allocation1 + $0x10] ss:$2 sm:$0xff] %v751_v4 }
  0x47   :  { %v362_v42 = vld.sshfl [vmem:[#allocation1] sm:$0xff pattern:$0x75316420]  ;;  %v363_v45 = vld.sshfl [vmem:[#allocation1 + $0x8] sm:$0xff pattern:$0x75316420] }
  0x48   :  { %244 = vrot.lane.b32.xlu1 %v231_v24, %s703_s26 }
  0x49   :  { %631 = vset.pattern.permute.xlu0 %v704_v36  ;;  %v366_v43 = vld.sshfl [vmem:[#allocation1 + $0x10] sm:$0xff pattern:$0x75316420]  ;;  %v367_v46 = vld.sshfl [vmem:[#allocation1 + $0x18] sm:$0xff pattern:$0x75316420] }
  0x4a   :  { %254 = vperm.xlu0 %631, %v747_v2   ;;  %246 = vrot.lane.b32.xlu2 %v235_v26, %s703_s26 }
  0x50   :  { %284 = vrot.lane.b32.xlu1 %v274_v27, %s705_s27 }
  0x52   :  { %632 = vset.pattern.permute.xlu0 %v706_v37  ;;  %286 = vrot.lane.b32.xlu2 %v278_v29, %s705_s27 }
  0x53   :  { %298 = vperm.xlu0 %632, %v747_v2  }
  0x58   :  { %288 = vrot.lane.b32.xlu1 %v275_v28, %s705_s27 }
  0x5a   :  { %290 = vrot.lane.b32.xlu2 %v279_v30, %s705_s27 }
  0x5b   :  { %633 = vset.pattern.permute.xlu0 %v707_v38 }
  0x5c   :  { %342 = vperm.xlu0 %633, %v747_v2  }
  0x60   :  { %328 = vrot.lane.b32.xlu1 %v318_v32, %s708_s28 }
  0x62   :  { %330 = vrot.lane.b32.xlu2 %v322_v34, %s708_s28  ;;  %v78_v39 = vpop.permute.xlu2 %77 }
  0x64   :  { %634 = vset.pattern.permute.xlu0 %v709_v40 }
  0x65   :  { %386 = vperm.xlu0 %634, %v747_v2  }
  0x68   :  { %332 = vrot.lane.b32.xlu1 %v319_v33, %s708_s28 }
  0x6a   :  { %334 = vrot.lane.b32.xlu2 %v323_v35, %s708_s28 }
  0x6c   :  { %v40_v41 = vpop.permute.xlu2 %39 }
  0x6d   :  { %636 = vset.pattern.permute.xlu0 %v697_v8  ;;  %v44_v56 = vperm.slane %v40_v41, %v783_v53 }
  0x6f   :  { %v46_v63 = vmul.f32 %v44_v56, %v749_v3  ;;  %v47_v12 = vmul.f32 %v44_v56, %v751_v4 }
  0x70   :  { %372 = vrot.lane.b32.xlu1 %v362_v42, %s710_s29 }
  0x72   :  { %374 = vrot.lane.b32.xlu2 %v366_v43, %s710_s29 }
  0x74   :  { %v113_v44 = vpop.permute.xlu2 %112 }
  0x78   :  { %376 = vrot.lane.b32.xlu1 %v363_v45, %s710_s29 }
  0x7a   :  { %v123_v48 = vpop.permute.xlu1 %122  ;;  %378 = vrot.lane.b32.xlu2 %v367_v46, %s710_s29 }
  0x7c   :  { %v153_v51 = vpop.permute.xlu2 %152 }
  0x82   :  { %v66_v54 = vpop.permute.xlu1 %65  ;;  %v62_v55 = vpop.permute.xlu0 %61 }
  0x83   :  { %v72_v57 = vsel %vm71_vm0, %v62_v55, %v66_v54  ;;  %v74_v58 = vsel %vm71_vm0, %v66_v54, %v62_v55 }
  0x84   :  { %v80_v59 = vmul.f32 %v78_v39, %v72_v57  ;;  %v81_v60 = vmul.f32 %v78_v39, %v74_v58  ;;  %v159_v61 = vpop.permute.xlu2 %158 }
  0x86   :  { %v88_v62 = vrot.slane %v81_v60, 4 }
  0x88   :  { %v91_v0 = vsel %vm90_vm1, %v80_v59, %v88_v62 }
  0x89   :  { %v95_v1 = vadd.f32 %v91_v0, %v46_v63 }
  0x8a   :  { %v68_v2 = vpop.permute.xlu1 %67  ;;  %v64_v5 = vpop.permute.xlu0 %63 }
  0x8b   :  { %v73_v6 = vsel %vm71_vm0, %v64_v5, %v68_v2  ;;  %v75_v7 = vsel %vm71_vm0, %v68_v2, %v64_v5  ;;  %vm581_vm0 = vcmask 785412  }
  0x8c   :  { %v82_v8 = vmul.f32 %v78_v39, %v73_v6  ;;  %v83_v9 = vmul.f32 %v78_v39, %v75_v7  ;;  %v199_v10 = vpop.permute.xlu2 %198 }
  0x8e   :  { %v89_v11 = vrot.slane %v83_v9, 4 }
  0x90   :  { %v92_v13 = vsel %vm90_vm1, %v82_v8, %v89_v11 }
  0x91   :  { %v96_v3 = vadd.f32 %v92_v13, %v47_v12 }
  0x92   :  { %v111_v14 = vpop.permute.xlu1 %110  ;;  %v109_v15 = vpop.permute.xlu0 %108 }
  0x93   :  { %v117_v16 = vsel %vm116_vm2, %v109_v15, %v113_v44  ;;  %v119_v17 = vsel %vm116_vm2, %v113_v44, %v109_v15 }
  0x94   :  { %v125_v18 = vmul.f32 %v123_v48, %v117_v16  ;;  %v126_v19 = vmul.f32 %v123_v48, %v119_v17  ;;  %v203_v20 = vpop.permute.xlu2 %202 }
  0x95   :  { %v208_v56 = vsel %vm204_vm4, %v203_v20, %v199_v10  ;;  %v206_v62 = vsel %vm204_vm4, %v199_v10, %v203_v20 }
  0x96   :  { %v133_v21 = vrot.slane %v126_v19, 4 }
  0x98   :  { %v135_v22 = vsel %vm90_vm1, %v125_v18, %v133_v21 }
  0x99   :  { %v139_v4 = vadd.f32 %v135_v22, %v95_v1 }
  0x9a   :  { %v115_v23 = vpop.permute.xlu0 %114  ;;  %v157_v24 = vpop.permute.xlu1 %156 }
  0x9b   :  { %v118_v25 = vsel %vm116_vm2, %v111_v14, %v115_v23  ;;  %v120_v26 = vsel %vm116_vm2, %v115_v23, %v111_v14  ;;  %v161_v27 = vsel %vm160_vm3, %v153_v51, %v157_v24  ;;  %v163_v28 = vsel %vm160_vm3, %v157_v24, %v153_v51  ;;  %vm582_vm2 = vmor %vm581_vm0, %vm90_vm1 }
  0x9c   :  { %v128_v29 = vmul.f32 %v123_v48, %v120_v26  ;;  %v243_v30 = vpop.permute.xlu2 %242  ;;  %v127_v31 = vmul.f32 %v123_v48, %v118_v25 }
  0x9e   :  { %v134_v32 = vrot.slane %v128_v29, 4 }
  0xa0   :  { %v136_v33 = vsel %vm90_vm1, %v127_v31, %v134_v32 }
  0xa1   :  { %v140_v34 = vadd.f32 %v136_v33, %v96_v3 }
  0xa2   :  { %v155_v35 = vpop.permute.xlu0 %154  ;;  %v197_v36 = vpop.permute.xlu1 %196 }
  0xa3   :  { %v164_v38 = vsel %vm160_vm3, %v159_v61, %v155_v35  ;;  %v162_v43 = vsel %vm160_vm3, %v155_v35, %v159_v61 }
  0xa4   :  { %v247_v37 = vpop.permute.xlu2 %246 }
  0xa5   :  { %v252_v16 = vsel %vm248_vm5, %v247_v37, %v243_v30  ;;  %v250_v24 = vsel %vm248_vm5, %v243_v30, %v247_v37 }
  0xaa   :  { %v167_v39 = vpop.permute.xlu0 %166  ;;  %v201_v40 = vpop.permute.xlu1 %200 }
  0xab   :  { %v170_v41 = vmul.f32 %v167_v39, %v163_v28  ;;  %v172_v42 = vmul.f32 %v167_v39, %v164_v38  ;;  %v169_v45 = vmul.f32 %v167_v39, %v161_v27  ;;  %v171_v46 = vmul.f32 %v167_v39, %v162_v43 }
  0xac   :  { %v287_v44 = vpop.permute.xlu2 %286  ;;  %v207_v57 = vsel %vm204_vm4, %v201_v40, %v197_v36  ;;  %v205_v63 = vsel %vm204_vm4, %v197_v36, %v201_v40 }
  0xad   :  { %v177_v47 = vrot.slane %v170_v41, 4  ;;  %v178_v48 = vrot.slane %v172_v42, 4 }
  0xaf   :  { %v179_v49 = vsel %vm90_vm1, %v169_v45, %v177_v47  ;;  %v180_v50 = vsel %vm90_vm1, %v171_v46, %v178_v48 }
  0xb0   :  { %v183_v51 = vadd.f32 %v179_v49, %v139_v4  ;;  %v184_v54 = vadd.f32 %v180_v50, %v140_v34 }
  0xb2   :  { %v822_v55 = vpop.permute.xlu1 %240 }
  0xb3   :  { %v211_v58 = vpop.permute.xlu0 %210 }
  0xb4   :  { %v214_v59 = vmul.f32 %v211_v58, %v207_v57  ;;  %v216_v60 = vmul.f32 %v211_v58, %v208_v56  ;;  %v291_v61 = vpop.permute.xlu2 %290  ;;  %v213_v0 = vmul.f32 %v211_v58, %v205_v63  ;;  %v215_v1 = vmul.f32 %v211_v58, %v206_v62 }
  0xb5   :  { %v296_v19 = vsel %vm292_vm6, %v291_v61, %v287_v44  ;;  %v294_v29 = vsel %vm292_vm6, %v287_v44, %v291_v61  ;;  %v405_v44 = vadd.s32 128, %v781_v52  ;;  %v410_v57 = vand.u32 15, %v781_v52 }
  0xb6   :  { %v221_v2 = vrot.slane %v214_v59, 4  ;;  %v222_v5 = vrot.slane %v216_v60, 4 }
  0xb7   :  { %vm433_vm10 = vcmp.lt.s32.totalorder %v405_v44, 224  ;;  %vm872_vm11 = vcmp.lt.s32.totalorder %v410_v57, 14 }
  0xb8   :  { %v223_v6 = vsel %vm90_vm1, %v213_v0, %v221_v2  ;;  %v224_v7 = vsel %vm90_vm1, %v215_v1, %v222_v5 }
  0xb9   :  { %v826_v8 = vadd.f32 %v223_v6, %v183_v51  ;;  %v228_v9 = vadd.f32 %v224_v7, %v184_v54  ;;  %v417_v51 = vand.u32 15, %v405_v44 }
  0xba   :  { %v245_v11 = vpop.permute.xlu1 %244 }
  0xbb   :  { %v251_v48 = vsel %vm248_vm5, %v245_v11, %v822_v55  ;;  %vm431_vm9 = vcmp.lt.s32.totalorder %v417_v51, 14  ;;  %v249_v60 = vsel %vm248_vm5, %v822_v55, %v245_v11 }
  0xbc   :  { %v255_v12 = vpop.permute.xlu0 %254  ;;  %v331_v13 = vpop.permute.xlu2 %330  ;;  %vm876_vm12 = vmand %vm431_vm9, %vm433_vm10 }
  0xbd   :  { %v260_v17 = vmul.f32 %v255_v12, %v252_v16  ;;  %v259_v26 = vmul.f32 %v255_v12, %v250_v24  ;;  %v258_v56 = vmul.f32 %v255_v12, %v251_v48  ;;  %v257_v2 = vmul.f32 %v255_v12, %v249_v60 }
  0xbf   :  { %v266_v4 = vrot.slane %v260_v17, 4  ;;  %v265_v62 = vrot.slane %v258_v56, 4 }
  0xc1   :  { %v268_v31 = vsel %vm90_vm1, %v259_v26, %v266_v4  ;;  %v267_v55 = vsel %vm90_vm1, %v257_v2, %v265_v62 }
  0xc2   :  { %v285_v3 = vpop.permute.xlu1 %284  ;;  %v272_v38 = vadd.f32 %v268_v31, %v228_v9 }
  0xc4   :  { %v335_v14 = vpop.permute.xlu2 %334 }
  0xc5   :  { %v828_v15 = vpop.permute.xlu0 %298  ;;  %v340_v20 = vsel %vm336_vm7, %v335_v14, %v331_v13  ;;  %v338_v25 = vsel %vm336_vm7, %v331_v13, %v335_v14 }
  0xc6   :  { %v304_v21 = vmul.f32 %v828_v15, %v296_v19  ;;  %v303_v32 = vmul.f32 %v828_v15, %v294_v29 }
  0xc8   :  { %v310_v27 = vrot.slane %v304_v21, 4  ;;  %v271_v21 = vadd.f32 %v267_v55, %v826_v8 }
  0xca   :  { %v289_v10 = vpop.permute.xlu1 %288  ;;  %v312_v37 = vsel %vm90_vm1, %v303_v32, %v310_v27 }
  0xcb   :  { %v316_v43 = vadd.f32 %v312_v37, %v272_v38  ;;  %v295_v54 = vsel %vm292_vm6, %v289_v10, %v285_v3  ;;  %v293_v5 = vsel %vm292_vm6, %v285_v3, %v289_v10 }
  0xcc   :  { %v375_v18 = vpop.permute.xlu2 %374  ;;  %v302_v58 = vmul.f32 %v828_v15, %v295_v54  ;;  %v301_v16 = vmul.f32 %v828_v15, %v293_v5 }
  0xce   :  { %v343_v22 = vpop.permute.xlu0 %342  ;;  %v309_v6 = vrot.slane %v302_v58, 4 }
  0xcf   :  { %v348_v23 = vmul.f32 %v343_v22, %v340_v20  ;;  %v347_v33 = vmul.f32 %v343_v22, %v338_v25 }
  0xd1   :  { %v354_v34 = vrot.slane %v348_v23, 4 }
  0xd2   :  { %v329_v28 = vpop.permute.xlu1 %328 }
  0xd3   :  { %v356_v40 = vsel %vm90_vm1, %v347_v33, %v354_v34 }
  0xd4   :  { %v379_v35 = vpop.permute.xlu2 %378  ;;  %v360_v47 = vadd.f32 %v356_v40, %v316_v43 }
  0xd5   :  { %v382_v30 = vsel %vm380_vm8, %v375_v18, %v379_v35  ;;  %v384_v36 = vsel %vm380_vm8, %v379_v35, %v375_v18  ;;  %v311_v18 = vsel %vm90_vm1, %v301_v16, %v309_v6 }
  0xd6   :  { %v315_v25 = vadd.f32 %v311_v18, %v271_v21  ;;  %v514_v18 = vld [vmem:[%s957_s2] sm:$0xf]  ;;  %s712_s2 = smov [#allocation5]  }
  0xd7   :  { %v387_v39 = vpop.permute.xlu0 %386 }
  0xd8   :  { %v391_v41 = vmul.f32 %v387_v39, %v382_v30  ;;  %v392_v42 = vmul.f32 %v387_v39, %v384_v36 }
  0xda   :  { %v398_v45 = vrot.slane %v392_v42, 4  ;;  %v333_v46 = vpop.permute.xlu1 %332 }
  0xdb   :  { %v339_v59 = vsel %vm336_vm7, %v333_v46, %v329_v28  ;;  %v337_v11 = vsel %vm336_vm7, %v329_v28, %v333_v46 }
  0xdc   :  { %v400_v49 = vsel %vm90_vm1, %v391_v41, %v398_v45  ;;  %v346_v63 = vmul.f32 %v343_v22, %v339_v59  ;;  %v345_v19 = vmul.f32 %v343_v22, %v337_v11 }
  0xdd   :  { %v860_v50 = vadd.f32 %v400_v49, %v360_v47 }
  0xde   :  { %v353_v12 = vrot.slane %v346_v63, 4 }
  0xdf   :  { %446 = vst [vmem:[#allocation1 + $0x10] ss:$2 sm:$0xff] %v860_v50 }
  0xe0   :  { %v355_v15 = vsel %vm90_vm1, %v345_v19, %v353_v12 }
  0xe1   :  { %v359_v28 = vadd.f32 %v355_v15, %v315_v25 }
  0xe2   :  { %v373_v61 = vpop.permute.xlu1 %372 }
  0xe6   :  { %v447_v7 = vld.sshfl [vmem:[#allocation1 + $0x10] sm:$0xff pattern:$0x75316420]  ;;  %v448_v9 = vld.sshfl [vmem:[#allocation1 + $0x18] sm:$0xff pattern:$0x75316420] }
  0xe7   :  { %v455_v13 = vsel %vm872_vm11, %v447_v7, 0.0  ;;  %v456_v14 = vsel %vm876_vm12, %v448_v9, 0.0 }
  0xe8   :  { %v462_v17 = vsel %vm90_vm1, %v455_v13, 0.0  ;;  %v463_v3 = vsel %vm90_vm1, %v456_v14, 0.0 }
  0xe9   :  { %v464_v10 = vadd.f32 %v463_v3, %v462_v17 }
  0xea   :  { %v377_v20 = vpop.permute.xlu1 %376 }
  0xeb   :  { %v381_v4 = vsel %vm380_vm8, %v373_v61, %v377_v20  ;;  %v383_v23 = vsel %vm380_vm8, %v377_v20, %v373_v61  ;;  %465 = vadd.xlane.f32.xlu2 %v464_v10 }
  0xec   :  { %v390_v24 = vmul.f32 %v387_v39, %v383_v23  ;;  %v389_v26 = vmul.f32 %v387_v39, %v381_v4  ;;  %v527_v4 = vld [vmem:[%s958_s3] sm:$0xf]  ;;  %s589_s3 = sshll.u32 %s712_s2, 4  ;;  %s590_s3 = int_to_ptr.vmem [resolvable:$true] %s589_s3 }
  0xee   :  { %v397_v27 = vrot.slane %v390_v24, 4 }
  0xf0   :  { %v399_v29 = vsel %vm90_vm1, %v389_v26, %v397_v27 }
  0xf1   :  { %v900_v22 = vadd.f32 %v399_v29, %v359_v28 }
  0xf3   :  { %442 = vst [vmem:[#allocation1] ss:$2 sm:$0xff] %v900_v22 }
  0xfa   :  { %v443_v8 = vld.sshfl [vmem:[#allocation1] sm:$0xff pattern:$0x75316420]  ;;  %v444_v31 = vld.sshfl [vmem:[#allocation1 + $0x8] sm:$0xff pattern:$0x75316420] }
  0xfb   :  { %v453_v52 = vsel %vm872_vm11, %v443_v8, 0.0  ;;  %v454_v32 = vsel %vm876_vm12, %v444_v31, 0.0 }
  0xfc   :  { %v457_v33 = vsel %vm90_vm1, %v453_v52, 0.0  ;;  %v458_v34 = vsel %vm90_vm1, %v454_v32, 0.0 }
  0xfd   :  { %v459_v35 = vadd.f32 %v458_v34, %v457_v33 }
  0xff   :  { %460 = vadd.xlane.f32.xlu1 %v459_v35 }
 0x15e   :  { %v466_v30 = vpop.xlane.xlu2 %465 }
 0x15f   :  { %v468_v37 = vsel %vm90_vm1, %v466_v30, 0.0 }
 0x172   :  { %v461_v36 = vpop.xlane.xlu1 %460 }
 0x173   :  { %v467_v38 = vsel %vm90_vm1, %v461_v36, 0.0 }
 0x174   :  { %v469_v39 = vadd.f32 %v468_v37, %v467_v38 }
 0x176   :  { %v470_v40 = vmul.f32 0.0025510204, %v469_v39 }
 0x178   :  { %v475_v41 = vperm.slane %v470_v40, %v783_v53 }
 0x17a   :  { %v477_v42 = vsub.f32 %v900_v22, %v475_v41  ;;  %v478_v43 = vsub.f32 %v860_v50, %v475_v41 }
 0x17c   :  { %481 = vst [vmem:[#allocation1] ss:$2 sm:$0xff] %v477_v42 }
 0x17d   :  { %485 = vst [vmem:[#allocation1 + $0x10] ss:$2 sm:$0xff] %v478_v43 }
 0x183   :  { %v482_v44 = vld.sshfl [vmem:[#allocation1] sm:$0xff pattern:$0x75316420]  ;;  %v483_v45 = vld.sshfl [vmem:[#allocation1 + $0x8] sm:$0xff pattern:$0x75316420] }
 0x184   :  { %v486_v46 = vld.sshfl [vmem:[#allocation1 + $0x10] sm:$0xff pattern:$0x75316420]  ;;  %v487_v47 = vld.sshfl [vmem:[#allocation1 + $0x18] sm:$0xff pattern:$0x75316420] }
 0x185   :  { %v494_v48 = vsel %vm872_vm11, %v486_v46, 0.0  ;;  %v495_v49 = vsel %vm876_vm12, %v487_v47, 0.0  ;;  %v492_v51 = vsel %vm872_vm11, %v482_v44, 0.0  ;;  %v493_v54 = vsel %vm876_vm12, %v483_v45, 0.0 }
 0x186   :  { %v498_v56 = vmul.f32 %v494_v48, %v494_v48  ;;  %v499_v57 = vmul.f32 %v495_v49, %v495_v49  ;;  %v496_v58 = vmul.f32 %v492_v51, %v492_v51  ;;  %v497_v59 = vmul.f32 %v493_v54, %v493_v54 }
 0x188   :  { %v505_v60 = vsel %vm90_vm1, %v498_v56, 0.0  ;;  %v506_v61 = vsel %vm90_vm1, %v499_v57, 0.0  ;;  %v500_v62 = vsel %vm90_vm1, %v496_v58, 0.0  ;;  %v501_v63 = vsel %vm90_vm1, %v497_v59, 0.0 }
 0x189   :  { %v507_v2 = vadd.f32 %v506_v61, %v505_v60  ;;  %v502_v5 = vadd.f32 %v501_v63, %v500_v62 }
 0x18b   :  { %508 = vadd.xlane.f32.xlu2 %v507_v2  ;;  %503 = vadd.xlane.f32.xlu0 %v502_v5 }
 0x1fe   :  { %v509_v6 = vpop.xlane.xlu2 %508  ;;  %v504_v7 = vpop.xlane.xlu0 %503 }
 0x1ff   :  { %v511_v9 = vsel %vm90_vm1, %v509_v6, 0.0  ;;  %v510_v55 = vsel %vm90_vm1, %v504_v7, 0.0 }
 0x200   :  { %v512_v11 = vadd.f32 %v511_v9, %v510_v55 }
 0x202   :  { %v513_v13 = vmul.f32 0.0025510204, %v512_v11 }
 0x204   :  { %v515_v14 = vadd.f32 1e-05, %v513_v13 }
 0x206   :  { %637 = vrsqrt.f32 %v515_v14  ;;  %vm522_vm14 = vweird.f32 %v515_v14 }
 0x20c   :  { %v638_v16 = vpop.eup %637 }
 0x20d   :  { %v517_v12 = vmul.f32 %v638_v16, %v515_v14  ;;  %vm523_vm13 = vweird.f32 %v638_v16 }
 0x20e   :  { %vm524_vm15 = vmor %vm522_vm14, %vm523_vm13 }
 0x20f   :  { %v518_v17 = vmul.f32 %v638_v16, %v517_v12 }
 0x211   :  { %v519_v3 = vmul.f32 0.5, %v518_v17 }
 0x213   :  { %v520_v10 = vsub.f32 1.5, %v519_v3 }
 0x215   :  { %v521_v19 = vmul.f32 %v638_v16, %v520_v10 }
 0x217   :  { %v525_v20 = vsel %vm524_vm15, %v638_v16, %v521_v19 }
 0x218   :  { %v526_v21 = vmul.f32 %v525_v20, %v514_v18 }
 0x21a   :  { %532 = vperm.xlu1 %635, %v526_v21   ;;  %v528_v23 = vmul.f32 %v526_v21, %v470_v40 }
 0x21c   :  { %v529_v15 = vsub.f32 %v527_v4, %v528_v23 }
 0x21e   :  { %543 = vperm.xlu2 %627, %v529_v15  }
 0x278   :  { %v544_v24 = vpop.permute.xlu2 %543 }
 0x279   :  { %v548_v27 = vperm.slane %v544_v24, %v783_v53 }
 0x28c   :  { %v533_v25 = vpop.permute.xlu1 %532 }
 0x28d   :  { %v537_v26 = vperm.slane %v533_v25, %v783_v53 }
 0x28f   :  { %v539_v28 = vmul.f32 %v537_v26, %v900_v22  ;;  %v540_v29 = vmul.f32 %v537_v26, %v860_v50 }
 0x291   :  { %v550_v8 = vadd.f32 %v548_v27, %v539_v28  ;;  %v551_v31 = vadd.f32 %v548_v27, %v540_v29 }
 0x293   :  { %v552_v52 = vmax.f32 %v550_v8, 0.0  ;;  %v553_v32 = vmax.f32 %v551_v31, 0.0 }
 0x295   :  { %556 = vst [vmem:[#allocation1] ss:$2 sm:$0xff] %v552_v52 }
 0x296   :  { %560 = vst [vmem:[#allocation1 + $0x10] ss:$2 sm:$0xff] %v553_v32 }
 0x29c   :  { %v557_v33 = vld.sshfl [vmem:[#allocation1] sm:$0xff pattern:$0x75316420]  ;;  %v558_v34 = vld.sshfl [vmem:[#allocation1 + $0x8] sm:$0xff pattern:$0x75316420] }
 0x29d   :  { %v561_v35 = vld.sshfl [vmem:[#allocation1 + $0x10] sm:$0xff pattern:$0x75316420]  ;;  %v562_v30 = vld.sshfl [vmem:[#allocation1 + $0x18] sm:$0xff pattern:$0x75316420] }
 0x29e   :  { %v568_v36 = vsel %vm876_vm12, %v558_v34, 0.0  ;;  %v570_v53 = vsel %vm876_vm12, %v562_v30, 0.0  ;;  %v567_v37 = vsel %vm872_vm11, %v557_v33, 0.0  ;;  %v569_v38 = vsel %vm872_vm11, %v561_v35, 0.0 }
 0x29f   :  { %v575_v50 = vrot.slane %v568_v36, 4  ;;  %v576_v22 = vrot.slane %v570_v53, 4 }
 0x2a1   :  { %v577_v39 = vsel %vm90_vm1, %v567_v37, %v575_v50  ;;  %v578_v1 = vsel %vm90_vm1, %v569_v38, %v576_v22 }
 0x2a2   :  { %583 = vst.msk [vmem:[#allocation5] sm:$0xff] %vm582_vm2, %v577_v39 }
 0x2a3   :  { %584 = vst.msk [vmem:[#allocation5 + $0x8] sm:$0xff] %vm582_vm2, %v578_v1 }
 0x2a4   :  { %597 = dma.vmem_to_hbm [thread:$0]  %s590_s3, 256, %s592_s10, [#allocation4], %s692_s20, %s692_s20, %s693_s21  }
 0x2a5   :  { %689 = dma.done.wait [#allocation4], 256  }
 0x2a6   :  { %690 = vsyncadd [#allocation4], 4294967040 }
 0x2a7   :  { %602 = vsyncpa [#allocation3], 1 }
 0x2a8   :  { %603 = vsyncpa [#allocation4], 1 }

</bundles_post_ra>
